<compile_context>
chip_gen: v6e
topology: v6e:2x2x1
jax: 0.10.0
libtpu: 0.0.40
codegen_flags: <defaults>
</compile_context>

<pallas_src>
import math

import jax
import jax.numpy as jnp
from jax import lax
from jax.experimental import pallas as pl
from jax.experimental.pallas import tpu as pltpu


# ---------------------------------------------------------------------------
# 1) Projection matmul:  proj_table = features @ W   (per-parameter-update).
#    bf16 inputs feed the 256-wide MXUs on v6e/v7x, f32 accumulation, and the
#    output tile is written back only on the last k-step (saves (K/tk - 1)
#    redundant vreg->VMEM stores; matters most on v5e's single vst slot).
# ---------------------------------------------------------------------------
def _matmul_kernel(a_ref, b_ref, o_ref, acc_ref):
    @pl.when(pl.program_id(2) == 0)
    def _():
        acc_ref[...] = jnp.zeros_like(acc_ref)

    acc_ref[...] += jnp.dot(a_ref[...], b_ref[...],
                            preferred_element_type=jnp.float32)

    @pl.when(pl.program_id(2) == pl.num_programs(2) - 1)
    def _():
        o_ref[...] = acc_ref[...].astype(o_ref.dtype)


def project_features(feat, w, *, tm=256, tn=256, tk=512,
                     compute_dtype=jnp.bfloat16):
    """feat: [V, F], w: [F, E]  ->  feat @ w as [V, E] float32 on the MXU.

    Defaults (tm=tn=256, tk=512, bf16 inputs) target v6e/v7x's 2x256^2 bf16 MXU;
    on v5e prefer tm=tn=128 (4x128^2 MXU) with tk=256-512.  Padding / slicing
    only happens when the shapes are not already tile-aligned.
    """
    m, k = feat.shape
    k2, n = w.shape
    assert k == k2, (feat.shape, w.shape)
    tm, tn, tk = min(tm, m), min(tn, n), min(tk, k)
    mp = tm * pl.cdiv(m, tm)
    np_ = tn * pl.cdiv(n, tn)
    kp = tk * pl.cdiv(k, tk)

    a = feat.astype(compute_dtype)
    b = w.astype(compute_dtype)
    if (mp, kp) != (m, k):
        a = jnp.pad(a, ((0, mp - m), (0, kp - k)))
    if (kp, np_) != (k, n):
        b = jnp.pad(b, ((0, kp - k), (0, np_ - n)))

    out = pl.pallas_call(
        _matmul_kernel,
        out_shape=jax.ShapeDtypeStruct((mp, np_), jnp.float32),
        grid_spec=pltpu.PrefetchScalarGridSpec(
            num_scalar_prefetch=0,
            grid=(mp // tm, np_ // tn, kp // tk),
            in_specs=[pl.BlockSpec((tm, tk), lambda i, j, kk: (i, kk)),
                      pl.BlockSpec((tk, tn), lambda i, j, kk: (kk, j))],
            out_specs=pl.BlockSpec((tm, tn), lambda i, j, kk: (i, j)),
            scratch_shapes=[pltpu.VMEM((tm, tn), jnp.float32)]),
        compiler_params=pltpu.CompilerParams(
            dimension_semantics=("parallel", "parallel", "arbitrary")),
    )(a, b)
    if (mp, np_) != (m, n):
        out = out[:m, :n]
    return out


# ---------------------------------------------------------------------------
# 2) Row gather:  out[i, :] = table[rows[i], :]
# ---------------------------------------------------------------------------
# Default node tile: 256-1024 rows amortizes the ~0.35 us grid-step overhead and
# keeps plenty of work per step; VMEM cost is tiny (2 x 512 x 128 x 4B = 512 KiB
# at E=128).  Tiny batches get the tile clamped down to a multiple of 8.
_DEFAULT_ROW_TILE = 512
# Combined-table VMEM residency budget.  The pipelined table input may be
# double-buffered, so 12 MiB means <= ~24 MiB of table + ~1 MiB of output blocks,
# inside the 32 MiB limit requested below (32 MiB <= physical VMEM on every
# generation; v7x only has 64 MiB total, so do NOT raise this budget past ~24 MiB).
_TABLE_VMEM_BUDGET_BYTES = 12 * 1024 * 1024
_GATHER_VMEM_LIMIT_BYTES = 32 * 1024 * 1024


def _gather_vmem_kernel(rows_ref, table_ref, out_ref):
    """Small-table path: table resident in VMEM, gather = dynamic vector loads.

    rows_ref : SMEM [N_pad] int32 (scalar prefetch) — global table row per node.
    table_ref: VMEM [V_total, E] — whole combined table (same block every step).
    out_ref  : VMEM [row_tile, E] pipelined, lane-dense output block.
    """
    tile = out_ref.shape[0]
    base = pl.program_id(0) * tile          # hoisted out of the row loop

    def body(j, carry):
        row = rows_ref[base + j]
        out_ref[pl.ds(j, 1), :] = table_ref[pl.ds(row, 1), :]
        return carry

    lax.fori_loop(0, tile, body, 0, unroll=8)


def _gather_hbm_kernel(rows_ref, table_ref, out_ref, copy_sem):
    """Large-table path: table stays in HBM, gather = per-row async DMAs.

    All `row_tile` copies are put in flight on one DMA semaphore before the
    drain loop waits, so row-fetch latency overlaps across the whole tile.
    """
    # TODO(synk): for v7x-scale tables, sort/bucket rows so adjacent global rows
    # coalesce into multi-row copies (512 B-per-descriptor DMAs are fixed-cost
    # bound long before HBM bandwidth).
    tile = out_ref.shape[0]
    base = pl.program_id(0) * tile

    def start(j, carry):
        row = rows_ref[base + j]
        pltpu.make_async_copy(table_ref.at[row], out_ref.at[j], copy_sem).start()
        return carry

    lax.fori_loop(0, tile, start, 0, unroll=8)

    def drain(j, carry):
        pltpu.make_async_copy(table_ref.at[0], out_ref.at[j], copy_sem).wait()
        return carry

    lax.fori_loop(0, tile, drain, 0, unroll=8)


def gather_rows(table, rows, *, row_tile=_DEFAULT_ROW_TILE,
                table_vmem_budget_bytes=_TABLE_VMEM_BUDGET_BYTES):
    """out = table[rows] via a tiled, pipelined Pallas gather."""
    n = rows.shape[0]
    v, e = table.shape
    # Clamp the row tile for tiny batches (multiple of 8 sublanes, minimal pad);
    # keep it large (256-1024) for real batches.  On v7x keep n_pad//row_tile >= 2
    # so the "parallel" node axis actually splits across both TensorCores.
    row_tile = max(8, 8 * pl.cdiv(min(row_tile, n), 8))
    n_pad = row_tile * pl.cdiv(n, row_tile)
    rows_p = rows.astype(jnp.int32)
    if n_pad != n:
        rows_p = jnp.pad(rows_p, (0, n_pad - n))   # padded rows gather table row 0
    num_tiles = n_pad // row_tile

    table_bytes = v * e * table.dtype.itemsize
    if table_bytes <= table_vmem_budget_bytes:
        kernel = _gather_vmem_kernel
        table_spec = pl.BlockSpec((v, e), lambda i, rows_smem: (0, 0))
        scratch = []
    else:
        kernel = _gather_hbm_kernel
        table_spec = pl.BlockSpec(memory_space=pl.ANY)   # raw HBM ref, manual DMA
        scratch = [pltpu.SemaphoreType.DMA(())]

    # NOTE: rows are scalar-prefetched into SMEM, which is fine up to ~10^5-10^6
    # nodes.  For larger batches switch the rows to a per-tile SMEM block:
    #   pl.BlockSpec((row_tile,), lambda i: (i,), memory_space=pltpu.MemorySpace.SMEM)
    out = pl.pallas_call(
        kernel,
        out_shape=jax.ShapeDtypeStruct((n_pad, e), table.dtype),
        grid_spec=pltpu.PrefetchScalarGridSpec(
            num_scalar_prefetch=1,                      # rows -> SMEM
            grid=(num_tiles,),
            in_specs=[table_spec],
            out_specs=pl.BlockSpec((row_tile, e), lambda i, rows_smem: (i, 0)),
            scratch_shapes=scratch),
        compiler_params=pltpu.CompilerParams(
            dimension_semantics=("parallel",),          # megacore-splittable
            vmem_limit_bytes=_GATHER_VMEM_LIMIT_BYTES),
    )(rows_p, table)
    if n_pad != n:
        out = out[:n]
    return out


# ---------------------------------------------------------------------------
# 3) RelGraphEmbedLayer forward (demo with 2 node types:
#    ntype 0 featureless -> embedding table, ntype 1 featured -> features @ W).
# ---------------------------------------------------------------------------
def build_embed_table(emb_table0, feat1, w1, **matmul_kwargs):
    """Per-parameter-update prologue (hoisted OUT of the per-batch path):
    project the featured type once and stack all per-type output tables."""
    proj_table1 = project_features(feat1, w1, **matmul_kwargs)    # [V1, E]
    table = jnp.concatenate([emb_table0, proj_table1], axis=0)    # [V0+V1, E]
    offsets = jnp.array([0, emb_table0.shape[0]], dtype=jnp.int32)
    return table, offsets


def rel_graph_embed_forward(node_tids, type_ids, table, offsets,
                            *, row_tile=_DEFAULT_ROW_TILE):
    """Per-batch forward: out[n] = table[offsets[node_tids[n]] + type_ids[n]]."""
    # TODO(synk): sparse-gradient bookkeeping (torch sparse=True / dgl
    # NodeEmbedding) is a training-time optimizer detail; forward math is complete.
    rows = type_ids.astype(jnp.int32) + offsets[node_tids.astype(jnp.int32)]
    return gather_rows(table, rows, row_tile=row_tile)


if __name__ == "__main__":
    key = jax.random.PRNGKey(0)
    k_tid, k_r0, k_r1, k_emb, k_feat, k_w = jax.random.split(key, 6)

    # Small shapes consistent with the module (E kept lane-dense = 128).
    N = 20      # nodes in the mini-batch (node_ids.shape[0])
    E = 128     # embed_size
    V0 = 64     # vocab of featureless ntype 0 (input_size[0] is an int)
    V1 = 32     # number of nodes of featured ntype 1
    F = 64      # raw feature dim of ntype 1 (input_size[1].shape[1])

    node_ids = jnp.arange(N, dtype=jnp.int32)               # only defines N
    node_tids = (jax.random.uniform(k_tid, (N,)) < 0.5).astype(jnp.int32)
    rows0 = jax.random.randint(k_r0, (N,), 0, V0, dtype=jnp.int32)
    rows1 = jax.random.randint(k_r1, (N,), 0, V1, dtype=jnp.int32)
    type_ids = jnp.where(node_tids == 0, rows0, rows1)       # valid per-type row

    # Parameters (same init as the PyTorch __init__).
    emb_table0 = jax.random.uniform(k_emb, (V0, E), jnp.float32, -1.0, 1.0)
    feat1 = jax.random.uniform(k_feat, (V1, F), jnp.float32, -1.0, 1.0)
    limit = math.sqrt(6.0 / (F + E))                          # xavier_uniform_
    w1 = jax.random.uniform(k_w, (F, E), jnp.float32, -limit, limit)

    # Hoisted prologue (runs once per parameter update, not per batch).
    table, offsets = build_embed_table(emb_table0, feat1, w1)
    table = jax.block_until_ready(table)

    # Per-batch forward.  Table is 96*128*4 B = 48 KiB -> VMEM-resident path.
    out = rel_graph_embed_forward(node_tids, type_ids, table, offsets)
    out = jax.block_until_ready(out)

    # Also exercise the large-table HBM DMA-gather path on the same data.
    rows = type_ids + offsets[node_tids]
    out_hbm = jax.block_until_ready(
        gather_rows(table, rows, table_vmem_budget_bytes=0))

    # References (same semantics as the PyTorch forward).
    is0 = (node_tids == 0)[:, None]
    ref0 = emb_table0[type_ids]                               # rows where tid == 0
    ref1_f32 = feat1[jnp.minimum(type_ids, V1 - 1)] @ w1      # rows where tid == 1
    ref1_bf16 = jnp.dot(feat1.astype(jnp.bfloat16)[jnp.minimum(type_ids, V1 - 1)],
                        w1.astype(jnp.bfloat16),
                        preferred_element_type=jnp.float32)
    ref_f32 = jnp.where(is0, ref0, ref1_f32)
    ref_bf16 = jnp.where(is0, ref0, ref1_bf16)

    assert out.shape == (N, E)
    # Featureless branch is a pure row gather -> bit exact.
    diff0 = jnp.where(is0, out - ref0, 0.0)
    assert float(jnp.max(jnp.abs(diff0))) == 0.0, "embedding gather not exact"
    # Featured branch matches a bf16-input / f32-accumulate projection closely...
    assert jnp.allclose(out, ref_bf16, rtol=1e-2, atol=1e-2), "mismatch vs bf16 ref"
    # ...and the full-f32 PyTorch math within bf16 input-rounding tolerance.
    assert jnp.allclose(out, ref_f32, rtol=5e-2, atol=5e-2), "mismatch vs f32 ref"
    # The two gather paths (VMEM-resident table vs HBM DMA) agree bit-exactly.
    assert bool(jnp.array_equal(out, out_hbm)), "VMEM vs HBM gather path mismatch"

    print("KERNEL_OK")
</pallas_src>

<mosaic_0001>
module attributes {stable_mosaic.version = 11 : i64} {
  func.func @_matmul_kernel(%arg0: i32, %arg1: i32, %arg2: i32, %arg3: memref<32x64xbf16, #tpu.memory_space<vmem>>, %arg4: memref<64x128xbf16, #tpu.memory_space<vmem>>, %arg5: memref<32x128xf32, #tpu.memory_space<vmem>>, %arg6: memref<32x128xf32, #tpu.memory_space<vmem>>) attributes {dimension_semantics = [#tpu.dimension_semantics<parallel>, #tpu.dimension_semantics<parallel>, #tpu.dimension_semantics<arbitrary>], iteration_bounds = array<i64: 1, 1, 1>, scalar_prefetch = 0 : i64, scratch_operands = 1 : i64, tpu.core_type = #tpu.core_type<tc>, window_params = [{transform_indices = @transform_0, window_bounds = array<i64: 32, 64>}, {transform_indices = @transform_1, window_bounds = array<i64: 64, 128>}, {transform_indices = @transform_2, window_bounds = array<i64: 32, 128>}]} {
    %c0_i32 = arith.constant 0 : i32
    %0 = arith.cmpi eq, %arg2, %c0_i32 : i32
    %1 = arith.extui %0 : i1 to i32
    %c0_i32_0 = arith.constant 0 : i32
    %2 = arith.cmpi ne, %1, %c0_i32_0 : i32
    scf.if %2 {
      %cst_10 = arith.constant 0.000000e+00 : f32
      %12 = vector.broadcast %cst_10 : f32 to vector<32x128xf32>
      %c0_11 = arith.constant 0 : index
      %c0_12 = arith.constant 0 : index
      %13 = vector.load %arg6[%c0_11, %c0_12] : memref<32x128xf32, #tpu.memory_space<vmem>>, vector<32x128xf32>
      tpu.vector_store %arg6[%c0_11, %c0_12], %12 {strides = array<i32>} : memref<32x128xf32, #tpu.memory_space<vmem>>, vector<32x128xf32>,
    } else {
    }
    %c0 = arith.constant 0 : index
    %c0_1 = arith.constant 0 : index
    %3 = vector.load %arg6[%c0, %c0_1] : memref<32x128xf32, #tpu.memory_space<vmem>>, vector<32x128xf32>
    %c0_2 = arith.constant 0 : index
    %c0_3 = arith.constant 0 : index
    %4 = vector.load %arg3[%c0_2, %c0_3] : memref<32x64xbf16, #tpu.memory_space<vmem>>, vector<32x64xbf16>
    %c0_4 = arith.constant 0 : index
    %c0_5 = arith.constant 0 : index
    %5 = vector.load %arg4[%c0_4, %c0_5] : memref<64x128xbf16, #tpu.memory_space<vmem>>, vector<64x128xbf16>
    %cst = arith.constant dense<0.000000e+00> : vector<32x128xf32>
    %6 = tpu.matmul %4, %5, %cst {dimension_numbers = #tpu.dot_dimension_numbers<[1], [0], [0], [1], [0, 0, 1, 1], [], []>} : vector<32x64xbf16>, vector<64x128xbf16>, vector<32x128xf32> -> vector<32x128xf32>
    %7 = arith.addf %3, %6 : vector<32x128xf32>
    %c0_6 = arith.constant 0 : index
    %c0_7 = arith.constant 0 : index
    %8 = vector.load %arg6[%c0_6, %c0_7] : memref<32x128xf32, #tpu.memory_space<vmem>>, vector<32x128xf32>
    tpu.vector_store %arg6[%c0_6, %c0_7], %7 {strides = array<i32>} : memref<32x128xf32, #tpu.memory_space<vmem>>, vector<32x128xf32>,
    %c0_i32_8 = arith.constant 0 : i32
    %9 = arith.cmpi eq, %arg2, %c0_i32_8 : i32
    %10 = arith.extui %9 : i1 to i32
    %c0_i32_9 = arith.constant 0 : i32
    %11 = arith.cmpi ne, %10, %c0_i32_9 : i32
    scf.if %11 {
      %c0_10 = arith.constant 0 : index
      %c0_11 = arith.constant 0 : index
      %12 = vector.load %arg6[%c0_10, %c0_11] : memref<32x128xf32, #tpu.memory_space<vmem>>, vector<32x128xf32>
      %c0_12 = arith.constant 0 : index
      %c0_13 = arith.constant 0 : index
      %13 = vector.load %arg5[%c0_12, %c0_13] : memref<32x128xf32, #tpu.memory_space<vmem>>, vector<32x128xf32>
      tpu.vector_store %arg5[%c0_12, %c0_13], %12 {strides = array<i32>} : memref<32x128xf32, #tpu.memory_space<vmem>>, vector<32x128xf32>,
    } else {
    }
    return
  }
  func.func @transform_0(%arg0: i32, %arg1: i32, %arg2: i32) -> (i32, i32) {
    %c0_i32 = arith.constant 0 : i32
    return %arg0, %arg2 : i32, i32
  }
  func.func @transform_1(%arg0: i32, %arg1: i32, %arg2: i32) -> (i32, i32) {
    %c0_i32 = arith.constant 0 : i32
    return %arg2, %arg1 : i32, i32
  }
  func.func @transform_2(%arg0: i32, %arg1: i32, %arg2: i32) -> (i32, i32) {
    %c0_i32 = arith.constant 0 : i32
    return %arg0, %arg1 : i32, i32
  }
}

</mosaic_0001>

<bundles_post_ra>
// kernel: tpu_custom_call.1
= control target key start
LH: loop header
LB: loop body
LE: loop exit
PB: predicated region body
PF: predicated region fallthrough
CT: control target
= control target key end

     0   :  { %7 = vsyncpa [#allocation4], 0  ;;  %s328_s0 = inlined_call_operand.hbm [shape: bf16[32,64], index: 0, kind: input, shape index: {}]   ;;  %s329_s1 = inlined_call_operand.hbm [shape: bf16[64,128], index: 1, kind: input, shape index: {}]   ;;  %s330_s2 = inlined_call_operand.hbm [shape: f32[32,128], index: 2, kind: output, shape index: {}]  }
   0x1   :  { %8 = vsyncpa [#allocation7], 0 }
   0x2   :  { %9 = vsyncpa [#allocation5], 0  ;;  %s297_s9 = smov [#allocation3]  }
   0x3   :  { %s15_s10 = sshll.u32 %s297_s9, 4  ;;  %s16_s10 = int_to_ptr.vmem [resolvable:$true] %s15_s10 }
   0x4   :  { %s239_s11 = scalar_lea.vmem %s16_s10, 256  ;;  %p244_p1 = scmp.lt.s32.totalorder %s16_s10, %s16_s10 }
   0x5   :  { %p240_p0 = scmp.ne.s32.totalorder %s16_s10, %s239_s11  ;;  %p245_p2 = scmp.lt.s32.totalorder %s239_s11, %s239_s11 }
   0x7   :  { %p246_p3 = por %p245_p2, %p244_p1 }
   0x9   :  { %p247_p4 = pnand %p246_p3, %p240_p0 }
   0xb   :  { %250 = shalt.err (!%p247_p4)
}
   0xc   :  { %s298_s12 = smov 64   ;;  %s299_s13 = smov 4  }
   0xd   :  { %21 = dma.hbm_to_vmem [thread:$0]  %s328_s0, 256, %s16_s10, [#allocation4], %s298_s12, %s298_s12, %s299_s13  }
   0xe   :  { %s300_s16 = smov [#allocation6]  }
   0xf   :  { %s27_s17 = sshll.u32 %s300_s16, 4  ;;  %s28_s17 = int_to_ptr.vmem [resolvable:$true] %s27_s17 }
  0x10   :  { %s259_s18 = scalar_lea.vmem %s28_s17, 512  ;;  %p264_p6 = scmp.lt.s32.totalorder %s28_s17, %s28_s17 }
  0x11   :  { %p260_p5 = scmp.ne.s32.totalorder %s28_s17, %s259_s18  ;;  %p265_p7 = scmp.lt.s32.totalorder %s259_s18, %s259_s18 }
  0x13   :  { %p266_p8 = por %p265_p7, %p264_p6 }
  0x15   :  { %p267_p9 = pnand %p266_p8, %p260_p5 }
  0x17   :  { %270 = shalt.err (!%p267_p9)
}
  0x18   :  { %33 = dma.hbm_to_vmem [thread:$0]  %s329_s1, 512, %s28_s17, [#allocation7], %s298_s12, %s298_s12, %s299_s13  }
  0x19   :  { %291 = dma.done.wait [#allocation4], 256  }
  0x1a   :  { %292 = vsyncadd [#allocation4], 4294967040 }
  0x1b   :  { %293 = dma.done.wait [#allocation7], 512  }
  0x1c   :  { %294 = vsyncadd [#allocation7], 4294966784  ;;  %v225_v0 = vld [vmem:[#allocation6 + $0x18] sm:$0xff]   ;;  %v226_v1 = vld [vmem:[#allocation6 + $0x10] sm:$0xff]   ;;  %vm99_vm0 = vcmask 523264   ;;  %s301_s0 = smov [#allocation8]  }
  0x1d   :  { %206 = vmatprep.subr.bf16.mxu0 %v225_v0  ;;  %v227_v2 = vld [vmem:[#allocation6 + $0x8] sm:$0xff]   ;;  %v229_v3 = vld [vmem:[#allocation3] sm:$0xff]   ;;  %v228_v4 = vld [vmem:[#allocation6] sm:$0xff]   ;;  %s179_s1 = sshll.u32 %s301_s0, 4  ;;  %s180_s1 = int_to_ptr.vmem [resolvable:$true] %s179_s1 }
  0x1e   :  { %207 = vmatpush3.bf16.msra.mxu0 %v225_v0  ;;  %214 = vmatprep.mubr.msk.bf16.mxu0 %vm99_vm0, %v229_v3  ;;  %v230_v5 = vld [vmem:[#allocation3 + $0x8] sm:$0xff]   ;;  %s271_s21 = scalar_lea.vmem %s180_s1, 512  ;;  %p276_p11 = scmp.lt.s32.totalorder %s180_s1, %s180_s1 }
  0x1f   :  { %208 = vmatprep.subr.bf16.mxu0 %v226_v1  ;;  %p272_p10 = scmp.ne.s32.totalorder %s180_s1, %s271_s21  ;;  %p277_p12 = scmp.lt.s32.totalorder %s271_s21, %s271_s21 }
  0x21   :  { %p278_p13 = por %p277_p12, %p276_p11 }
  0x22   :  { %209 = vmatpush3.bf16.msra.mxu0 %v226_v1 }
  0x23   :  { %210 = vmatprep.subr.bf16.mxu0 %v227_v2  ;;  %p279_p0 = pnand %p278_p13, %p272_p10 }
  0x26   :  { %211 = vmatpush3.bf16.msra.mxu0 %v227_v2 }
  0x27   :  { %212 = vmatprep.subr.bf16.mxu0 %v228_v4 }
  0x2a   :  { %213 = vmatpush3.bf16.msra.mxu0 %v228_v4 }
  0x2d   :  { %215 = vmatmul.mubr.msk.bf16.vlgmr.msra.gmra.mxu0 %vm99_vm0, %v230_v5 }
  0xed   :  { %v216_v6 = vpop.f32.mrf.mxu0 }
  0xee   :  { %172 = vst [vmem:[#allocation8 + $0x10] sm:$0xff] %v216_v6 }
  0xef   :  { %v140_v7 = vpop.f32.mrf.mxu0 }
  0xf0   :  { %170 = vst [vmem:[#allocation8] sm:$0xff] %v140_v7 }
  0xf1   :  { %v217_v8 = vpop.f32.mrf.mxu0 }
  0xf2   :  { %173 = vst [vmem:[#allocation8 + $0x18] sm:$0xff] %v217_v8 }
  0xf3   :  { %v143_v9 = vpop.f32.mrf.mxu0 }
  0xf4   :  { %171 = vst [vmem:[#allocation8 + $0x8] sm:$0xff] %v143_v9 }
  0xf5   :  { %282 = shalt.err (!%p279_p0)
}
  0xf6   :  { %s302_s22 = smov 128   ;;  %s303_s23 = smov 8  }
  0xf7   :  { %185 = dma.vmem_to_hbm [thread:$0]  %s180_s1, 512, %s330_s2, [#allocation5], %s302_s22, %s302_s22, %s303_s23  }
  0xf8   :  { %295 = dma.done.wait [#allocation5], 512  }
  0xf9   :  { %296 = vsyncadd [#allocation5], 4294966784 }
  0xfa   :  { %189 = vsyncpa [#allocation4], 1 }
  0xfb   :  { %190 = vsyncpa [#allocation7], 1 }
  0xfc   :  { %191 = vsyncpa [#allocation5], 1 }

</bundles_post_ra>
